<compile_context>
chip_gen: v7x
topology: tpu7x:2x2x1
jax: 0.10.0
libtpu: 0.0.40
codegen_flags: <defaults>
</compile_context>

<pallas_src>
import functools

import jax
import jax.numpy as jnp
from jax.experimental import pallas as pl
from jax.experimental.pallas import tpu as pltpu

LANE = 128


def _round_up(n, m):
    return ((n + m - 1) // m) * m


def model_kernel(x2a_ref, x2c_ref, wcd_ref, w1a_ref, out_ref):
    """Fused fc_1 -> addmm -> fc_2 for a single flattened row (N == 1).

    Exact rewrite of  fc_2( v1 + v1.T @ x2 )  with v1 = fc_1(x2):
        out[h, o] = c[o] + v1[h] * d[o]
        c[o] = sum_f v1[f] * w2t[f, o] + b2[o]  ==  (x2a @ (w1at @ w2t  [+ b2 row]))[o]
        d[o] = sum_f x2[f] * w2t[f, o]          ==  (x2a @ w2t)[o]
    Both weight-side factors are pre-multiplied/packed at init into wcd = [Wc | w2t].
    """
    h_out = out_ref.shape[0]
    op = out_ref.shape[1]

    # One lane-dense MXU matmul produces both row quantities: [c (+b2) | d].
    cd = jnp.dot(x2a_ref[...], wcd_ref[...],
                 preferred_element_type=jnp.float32)                 # (1, 2*Op)
    c = cd[:, :op]                                                    # (1, Op)
    d = cd[:, op:]                                                    # (1, Op)

    # v1 directly in column orientation (independent of cd -> overlaps on MXU).
    v1c = jnp.dot(w1a_ref[...], x2c_ref[...],
                  preferred_element_type=jnp.float32)                 # (Hp, 1)

    # Rank-1 combine on the VPU; output is lane dense (Op % 128 == 0).
    out_ref[...] = c + v1c[:h_out, :] * d                             # (H, Op)


def pack_params(w1, b1, w2, b2):
    """One-time weight repacking (hoisted out of the per-call path).

    Returns:
      wcd : (Fp, 2*Op) f32 = [ w1at @ w2t with b2 folded into the augmentation
                               row F  |  w2t (fc_2 weight transposed, padded) ]
      w1a : (Hp, Fp)  f32  = fc_1 weight with b1 folded into column F
    """
    h_dim, f_dim = w1.shape
    o_dim, k2 = w2.shape
    assert k2 == h_dim == f_dim  # consistent configuration (see module header)

    fp = _round_up(f_dim + 1, LANE)   # +1 column/row for the folded-bias "1"
    hp = _round_up(h_dim, LANE)
    op = _round_up(o_dim, LANE)

    w1 = jnp.asarray(w1, jnp.float32)
    b1 = jnp.asarray(b1, jnp.float32)
    w2 = jnp.asarray(w2, jnp.float32)
    b2 = jnp.asarray(b2, jnp.float32)

    # fc_1 weight (row-major) with bias folded into augmented column F.
    w1a = jnp.zeros((hp, fp), jnp.float32)
    w1a = w1a.at[:h_dim, :f_dim].set(w1).at[:h_dim, f_dim].set(b1)

    # fc_2 weight transposed, zero padded. Rows >= F stay zero, so the
    # augmented "1" in x2a contributes nothing to d.
    w2t = jnp.zeros((hp, op), jnp.float32).at[:k2, :o_dim].set(w2.T)

    # Weight-weight product for c = v1 @ w2t, with b2 folded into row F
    # (x2a[F] == 1 there, while w2t[F, :] == 0 keeps d clean).
    wc = (w1a.T @ w2t).at[f_dim, :o_dim].add(b2)
    wcd = jnp.concatenate([wc, w2t], axis=1)                          # (Fp, 2*Op)
    return wcd, w1a


@functools.partial(jax.jit, static_argnames=("h_dim", "o_dim"))
def model_forward(x1, wcd, w1a, *, h_dim, o_dim):
    """x1: (N, C, S, S) f32 + packed params -> (H, O) f32, matching Model.forward."""
    n_rows = x1.shape[0] * x1.shape[1]
    f_dim = x1.shape[2] * x1.shape[3]
    # torch.addmm(v1, v1.t(), x2) is only shape-valid when the flattened batch
    # is 1 and F == H (documented deviation from the shape-invalid originals).
    assert n_rows == 1 and f_dim == h_dim

    fp = _round_up(f_dim + 1, LANE)
    op = _round_up(o_dim, LANE)

    # Per-call work: only the ~512 B augmented activation (row + column view).
    x2 = x1.reshape(1, f_dim).astype(jnp.float32)
    x2a = jnp.concatenate(
        [x2, jnp.ones((1, 1), jnp.float32),
         jnp.zeros((1, fp - f_dim - 1), jnp.float32)], axis=1)        # (1, Fp)
    x2c = x2a.reshape(fp, 1)                                          # (Fp, 1)

    vmem = pl.BlockSpec(memory_space=pltpu.MemorySpace.VMEM)
    out_padded = pl.pallas_call(
        model_kernel,
        out_shape=jax.ShapeDtypeStruct((h_dim, op), jnp.float32),
        in_specs=[vmem, vmem, vmem, vmem],
        out_specs=vmem,
    )(x2a, x2c, wcd, w1a)

    # Padded columns are exact zeros; slice back to the module's (H, O) shape.
    # (Downstream consumers could keep the padded (H, 128) slab for free.)
    return out_padded[:, :o_dim]


if __name__ == "__main__":
    key = jax.random.PRNGKey(0)
    k1, k2, k3, k4, k5 = jax.random.split(key, 5)

    S = 8
    F = S * S      # 64  (x1.view(-1, 64))
    H = 64         # fc_1 out_features; must equal F for addmm to be shape-valid
    O = 10         # fc_2 out_features (as in the original module)

    x1 = jax.random.normal(k1, (1, 1, S, S), dtype=jnp.float32)

    # Deterministic PyTorch-style init: U(-1/sqrt(fan_in), 1/sqrt(fan_in))
    bound1 = 1.0 / (F ** 0.5)
    w1 = jax.random.uniform(k2, (H, F), jnp.float32, -bound1, bound1)
    b1 = jax.random.uniform(k3, (H,), jnp.float32, -bound1, bound1)
    bound2 = 1.0 / (H ** 0.5)
    w2 = jax.random.uniform(k4, (O, H), jnp.float32, -bound2, bound2)
    b2 = jax.random.uniform(k5, (O,), jnp.float32, -bound2, bound2)

    # One-time parameter packing (hoisted out of the per-call path).
    wcd, w1a = pack_params(w1, b1, w2, b2)
    jax.block_until_ready((wcd, w1a))

    out = model_forward(x1, wcd, w1a, h_dim=H, o_dim=O)
    jax.block_until_ready(out)

    # Pure-JAX reference (mirrors the torch forward op-for-op).
    x2 = x1.reshape(-1, F)
    v1 = x2 @ w1.T + b1
    v2 = v1 + v1.T @ x2
    ref = v2 @ w2.T + b2
    assert out.shape == (H, O)
    assert jnp.allclose(out, ref, atol=1e-4, rtol=1e-4)

    print("KERNEL_OK")
</pallas_src>

<mosaic_0001>
module attributes {stable_mosaic.version = 11 : i64} {
  func.func @model_kernel(%arg0: memref<1x128xf32, #tpu.memory_space<vmem>>, %arg1: memref<128x1xf32, #tpu.memory_space<vmem>>, %arg2: memref<128x256xf32, #tpu.memory_space<vmem>>, %arg3: memref<128x128xf32, #tpu.memory_space<vmem>>, %arg4: memref<64x128xf32, #tpu.memory_space<vmem>>) attributes {dimension_semantics = [], scalar_prefetch = 0 : i64, scratch_operands = 0 : i64, tpu.core_type = #tpu.core_type<tc>} {
    %c0 = arith.constant 0 : index
    %c0_0 = arith.constant 0 : index
    %0 = vector.load %arg0[%c0, %c0_0] : memref<1x128xf32, #tpu.memory_space<vmem>>, vector<1x128xf32>
    %c0_1 = arith.constant 0 : index
    %c0_2 = arith.constant 0 : index
    %1 = vector.load %arg2[%c0_1, %c0_2] : memref<128x256xf32, #tpu.memory_space<vmem>>, vector<128x256xf32>
    %cst = arith.constant dense<0.000000e+00> : vector<1x256xf32>
    %2 = tpu.matmul %0, %1, %cst {dimension_numbers = #tpu.dot_dimension_numbers<[1], [0], [0], [1], [0, 0, 1, 1], [], []>} : vector<1x128xf32>, vector<128x256xf32>, vector<1x256xf32> -> vector<1x256xf32>
    %3 = vector.extract_strided_slice %2 {offsets = [0, 0], sizes = [1, 128], strides = [1, 1]} : vector<1x256xf32> to vector<1x128xf32>
    %4 = vector.extract_strided_slice %2 {offsets = [0, 128], sizes = [1, 128], strides = [1, 1]} : vector<1x256xf32> to vector<1x128xf32>
    %c0_3 = arith.constant 0 : index
    %c0_4 = arith.constant 0 : index
    %5 = vector.load %arg3[%c0_3, %c0_4] : memref<128x128xf32, #tpu.memory_space<vmem>>, vector<128x128xf32>
    %c0_5 = arith.constant 0 : index
    %c0_6 = arith.constant 0 : index
    %6 = vector.load %arg1[%c0_5, %c0_6] : memref<128x1xf32, #tpu.memory_space<vmem>>, vector<128x1xf32>
    %cst_7 = arith.constant dense<0.000000e+00> : vector<128x1xf32>
    %7 = tpu.matmul %5, %6, %cst_7 {dimension_numbers = #tpu.dot_dimension_numbers<[1], [0], [0], [1], [0, 0, 1, 1], [], []>} : vector<128x128xf32>, vector<128x1xf32>, vector<128x1xf32> -> vector<128x1xf32>
    %8 = vector.extract_strided_slice %7 {offsets = [0, 0], sizes = [64, 1], strides = [1, 1]} : vector<128x1xf32> to vector<64x1xf32>
    %9 = vector.broadcast %8 : vector<64x1xf32> to vector<64x128xf32>
    %10 = vector.broadcast %4 : vector<1x128xf32> to vector<64x128xf32>
    %11 = arith.mulf %9, %10 : vector<64x128xf32>
    %12 = vector.broadcast %3 : vector<1x128xf32> to vector<64x128xf32>
    %13 = arith.addf %12, %11 : vector<64x128xf32>
    %c0_8 = arith.constant 0 : index
    %c0_9 = arith.constant 0 : index
    %14 = vector.load %arg4[%c0_8, %c0_9] : memref<64x128xf32, #tpu.memory_space<vmem>>, vector<64x128xf32>
    tpu.vector_store %arg4[%c0_8, %c0_9], %13 {strides = array<i32>} : memref<64x128xf32, #tpu.memory_space<vmem>>, vector<64x128xf32>,
    return
  }
}

</mosaic_0001>

<bundles_post_ra>
// kernel: model_forward.1
= control target key start
LH: loop header
LB: loop body
LE: loop exit
PB: predicated region body
PF: predicated region fallthrough
CT: control target
= control target key end

     0   :  { %9 = vsyncpa [#allocation3], 0  ;;  %s564_s15 = smov [#allocation2]   ;;  %s729_s0 = inlined_call_operand.vmem [shape: f32[1,128], index: 0, kind: input, shape index: {}]   ;;  %s730_s1 = inlined_call_operand.vmem [shape: f32[128,1], index: 1, kind: input, shape index: {}]   ;;  %s731_s2 = inlined_call_operand.hbm [shape: f32[128,256], index: 2, kind: input, shape index: {}]   ;;  %s732_s3 = inlined_call_operand.vmem [shape: f32[128,128], index: 3, kind: input, shape index: {}]   ;;  %s733_s4 = inlined_call_operand.vmem [shape: f32[64,128], index: 4, kind: output, shape index: {}]  }
   0x1   :  { %s19_s16 = sshll.u32 %s564_s15, 4  ;;  %s540_s19 = scalar_lea.hbm %s731_s2, 4096  ;;  %s20_s16 = int_to_ptr.vmem [resolvable:$true] %s19_s16 }
   0x2   :  { %p541_p0 = scmp.ne.s32.totalorder %s731_s2, %s540_s19  ;;  %p544_p1 = scmp.lt.u32.totalorder %s540_s19, %s731_s2 }
   0x4   :  { %p546_p2 = pnand %p544_p1, %p541_p0 }
   0x6   :  { %549 = shalt.err (!%p546_p2)
}
   0x7   :  { %s550_s24 = scalar_lea.vmem %s20_s16, 4096  ;;  %p555_p4 = scmp.lt.s32.totalorder %s20_s16, %s20_s16 }
   0x8   :  { %p551_p3 = scmp.ne.s32.totalorder %s20_s16, %s550_s24  ;;  %p556_p5 = scmp.lt.s32.totalorder %s550_s24, %s550_s24 }
   0xa   :  { %p557_p6 = por %p556_p5, %p555_p4 }
   0xc   :  { %p558_p7 = pnand %p557_p6, %p551_p3 }
   0xe   :  { %561 = shalt.err (!%p558_p7)
}
   0xf   :  { %s565_s25 = smov 256   ;;  %s566_s26 = smov 16  }
  0x10   :  { %25 = dma.hbm_to_vmem [thread:$0]  %s731_s2, 4096, %s20_s16, [#allocation3], %s565_s25, %s565_s25, %s566_s26  }
  0x11   :  { %562 = dma.done.wait [#allocation3], 4096  }
  0x12   :  { %563 = vsyncadd [#allocation3], 4294963200  ;;  %v567_v0 = vmov 0.0   ;;  %v568_v1 = vmov 0   ;;  %v151_v2 = vld [vmem:[%s730_s1] sm:$0xff]  ;;  %v152_v3 = vld [vmem:[%s730_s1 + $0x8] sm:$0xff] }
  0x13   :  { %128 = vmatprep.mubr.f32.mxu0 %v567_v0  ;;  %538 = vset.pattern.permute.xlu0 %v568_v1  ;;  %v153_v4 = vld [vmem:[%s730_s1 + $0x10] sm:$0xff]  ;;  %v501_v5 = vpack.c.bf16 %v152_v3, %v151_v2  ;;  %v154_v6 = vld [vmem:[%s730_s1 + $0x18] sm:$0xff]  ;;  %v155_v8 = vld [vmem:[%s730_s1 + $0x20] sm:$0xff] }
  0x14   :  { %539 = vset.pattern.permute.xlu1 %v568_v1  ;;  %v505_v7 = vpack.c.bf16 %v154_v6, %v153_v4  ;;  %v156_v9 = vld [vmem:[%s730_s1 + $0x28] sm:$0xff]  ;;  %v135_v11 = vld [vmem:[%s732_s3] sm:$0xff]  ;;  %v157_v12 = vld [vmem:[%s730_s1 + $0x30] sm:$0xff] }
  0x15   :  { %502 = vmatprep.subr.bf16.mxu1 %v501_v5  ;;  %v509_v10 = vpack.c.bf16 %v156_v9, %v155_v8  ;;  %v158_v13 = vld [vmem:[%s730_s1 + $0x38] sm:$0xff]  ;;  %445 = vmatprep.mubr.f32.mxu1 %v135_v11  ;;  %v159_v14 = vld [vmem:[%s730_s1 + $0x40] sm:$0xff]  ;;  %v160_v15 = vld [vmem:[%s730_s1 + $0x48] sm:$0xff] }
  0x16   :  { %504 = vmatpush3.bf16.msra.mxu1 %v501_v5  ;;  %v33_v16 = vld [vmem:[#allocation2 + $0x8] sm:$0xff]  ;;  %v35_v17 = vld [vmem:[#allocation2 + $0x18] sm:$0xff]  ;;  %v32_v18 = vld [vmem:[#allocation2] sm:$0xff]  ;;  %v513_v19 = vpack.c.bf16 %v158_v13, %v157_v12  ;;  %v517_v31 = vpack.c.bf16 %v160_v15, %v159_v14 }
  0x17   :  { %506 = vmatprep.subr.bf16.mxu1 %v505_v7  ;;  %v469_v20 = vpack.c.bf16 %v35_v17, %v33_v16  ;;  %v34_v21 = vld [vmem:[#allocation2 + $0x10] sm:$0xff]  ;;  %v37_v22 = vld [vmem:[#allocation2 + $0x28] sm:$0xff]  ;;  %v39_v23 = vld [vmem:[#allocation2 + $0x38] sm:$0xff] }
  0x18   :  { %v471_v24 = vpack.c.bf16 %v34_v21, %v32_v18  ;;  %v473_v25 = vpack.c.bf16 %v39_v23, %v37_v22  ;;  %v36_v26 = vld [vmem:[#allocation2 + $0x20] sm:$0xff]  ;;  %v38_v27 = vld [vmem:[#allocation2 + $0x30] sm:$0xff]  ;;  %v41_v28 = vld [vmem:[#allocation2 + $0x48] sm:$0xff] }
  0x19   :  { %470 = vmatprep.subr.bf16.mxu0 %v469_v20  ;;  %v43_v29 = vld [vmem:[#allocation2 + $0x58] sm:$0xff]  ;;  %v475_v30 = vpack.c.bf16 %v38_v27, %v36_v26  ;;  %v161_v32 = vld [vmem:[%s730_s1 + $0x50] sm:$0xff]  ;;  %v40_v34 = vld [vmem:[#allocation2 + $0x40] sm:$0xff] }
  0x1a   :  { %508 = vmatpush3.bf16.msra.mxu1 %v505_v7  ;;  %472 = vmatpush1.bf16.msra.mxu0 %v471_v24  ;;  %v477_v33 = vpack.c.bf16 %v43_v29, %v41_v28  ;;  %v42_v35 = vld [vmem:[#allocation2 + $0x50] sm:$0xff]  ;;  %v162_v36 = vld [vmem:[%s730_s1 + $0x58] sm:$0xff]  ;;  %v45_v37 = vld [vmem:[#allocation2 + $0x68] sm:$0xff] }
  0x1b   :  { %510 = vmatprep.subr.bf16.mxu1 %v509_v10  ;;  %474 = vmatprep.subr.bf16.mxu0 %v473_v25  ;;  %v47_v38 = vld [vmem:[#allocation2 + $0x78] sm:$0xff]  ;;  %v479_v39 = vpack.c.bf16 %v42_v35, %v40_v34  ;;  %v521_v40 = vpack.c.bf16 %v162_v36, %v161_v32  ;;  %v163_v41 = vld [vmem:[%s730_s1 + $0x60] sm:$0xff]  ;;  %v46_v44 = vld [vmem:[#allocation2 + $0x70] sm:$0xff] }
  0x1c   :  { %v481_v42 = vpack.c.bf16 %v47_v38, %v45_v37  ;;  %v44_v43 = vld [vmem:[#allocation2 + $0x60] sm:$0xff]  ;;  %v164_v45 = vld [vmem:[%s730_s1 + $0x68] sm:$0xff]  ;;  %v51_v47 = vld [vmem:[#allocation2 + $0x98] sm:$0xff] }
  0x1d   :  { %v49_v46 = vld [vmem:[#allocation2 + $0x88] sm:$0xff]  ;;  %v483_v48 = vpack.c.bf16 %v46_v44, %v44_v43  ;;  %v525_v49 = vpack.c.bf16 %v164_v45, %v163_v41  ;;  %v165_v50 = vld [vmem:[%s730_s1 + $0x70] sm:$0xff]  ;;  %v48_v52 = vld [vmem:[#allocation2 + $0x80] sm:$0xff]  ;;  %v344_v45 = vlaneseq }
  0x1e   :  { %512 = vmatpush3.bf16.msra.mxu1 %v509_v10  ;;  %476 = vmatpush1.bf16.msra.mxu0 %v475_v30  ;;  %v485_v51 = vpack.c.bf16 %v51_v47, %v49_v46  ;;  %v50_v53 = vld [vmem:[#allocation2 + $0x90] sm:$0xff]  ;;  %v166_v54 = vld [vmem:[%s730_s1 + $0x78] sm:$0xff]  ;;  %v53_v55 = vld [vmem:[#allocation2 + $0xa8] sm:$0xff] }
  0x1f   :  { %514 = vmatprep.subr.bf16.mxu1 %v513_v19  ;;  %478 = vmatprep.subr.bf16.mxu0 %v477_v33  ;;  %v55_v56 = vld [vmem:[#allocation2 + $0xb8] sm:$0xff]  ;;  %v487_v57 = vpack.c.bf16 %v50_v53, %v48_v52  ;;  %v529_v58 = vpack.c.bf16 %v166_v54, %v165_v50  ;;  %v52_v60 = vld [vmem:[#allocation2 + $0xa0] sm:$0xff]  ;;  %v54_v61 = vld [vmem:[#allocation2 + $0xb0] sm:$0xff]  ;;  %v345_v46 = vshrl.u32 %v344_v45, 7 }
  0x20   :  { %v489_v59 = vpack.c.bf16 %v55_v56, %v53_v55  ;;  %v57_v62 = vld [vmem:[#allocation2 + $0xc8] sm:$0xff]  ;;  %v59_v63 = vld [vmem:[#allocation2 + $0xd8] sm:$0xff]  ;;  %v491_v0 = vpack.c.bf16 %v54_v61, %v52_v60  ;;  %v56_v2 = vld [vmem:[#allocation2 + $0xc0] sm:$0xff] }
  0x21   :  { %v493_v1 = vpack.c.bf16 %v59_v63, %v57_v62  ;;  %v58_v3 = vld [vmem:[#allocation2 + $0xd0] sm:$0xff]  ;;  %v61_v4 = vld [vmem:[#allocation2 + $0xe8] sm:$0xff]  ;;  %v63_v5 = vld [vmem:[#allocation2 + $0xf8] sm:$0xff]  ;;  %v346_v47 = vsub.s32 0, %v345_v46 }
  0x22   :  { %516 = vmatpush3.bf16.msra.mxu1 %v513_v19  ;;  %480 = vmatpush1.bf16.msra.mxu0 %v479_v39  ;;  %v136_v6 = vld [vmem:[%s732_s3 + $0x8] sm:$0xff]  ;;  %v495_v7 = vpack.c.bf16 %v58_v3, %v56_v2  ;;  %v137_v8 = vld [vmem:[%s732_s3 + $0x10] sm:$0xff]  ;;  %v497_v9 = vpack.c.bf16 %v63_v5, %v61_v4  ;;  %v60_v10 = vld [vmem:[#allocation2 + $0xe0] sm:$0xff] }
  0x23   :  { %518 = vmatprep.subr.bf16.mxu1 %v517_v31  ;;  %482 = vmatprep.subr.bf16.mxu0 %v481_v42  ;;  %v62_v11 = vld [vmem:[#allocation2 + $0xf0] sm:$0xff]  ;;  %v138_v12 = vld [vmem:[%s732_s3 + $0x18] sm:$0xff]  ;;  %v139_v14 = vld [vmem:[%s732_s3 + $0x20] sm:$0xff] }
  0x24   :  { %v499_v13 = vpack.c.bf16 %v62_v11, %v60_v10  ;;  %v140_v15 = vld [vmem:[%s732_s3 + $0x28] sm:$0xff]  ;;  %v31_v16 = vld [vmem:[%s729_s0] sm:$0x1]  ;;  %v141_v17 = vld [vmem:[%s732_s3 + $0x30] sm:$0xff] }
  0x25   :  { %v142_v18 = vld [vmem:[%s732_s3 + $0x38] sm:$0xff]  ;;  %v143_v19 = vld [vmem:[%s732_s3 + $0x40] sm:$0xff]  ;;  %v144_v20 = vld [vmem:[%s732_s3 + $0x48] sm:$0xff] }
  0x26   :  { %520 = vmatpush3.bf16.msra.mxu1 %v517_v31  ;;  %484 = vmatpush1.bf16.msra.mxu0 %v483_v48  ;;  %v145_v21 = vld [vmem:[%s732_s3 + $0x50] sm:$0xff]  ;;  %v146_v22 = vld [vmem:[%s732_s3 + $0x58] sm:$0xff]  ;;  %v147_v23 = vld [vmem:[%s732_s3 + $0x60] sm:$0xff] }
  0x27   :  { %522 = vmatprep.subr.bf16.mxu1 %v521_v40  ;;  %486 = vmatprep.subr.bf16.mxu0 %v485_v51  ;;  %v148_v24 = vld [vmem:[%s732_s3 + $0x68] sm:$0xff]  ;;  %v149_v25 = vld [vmem:[%s732_s3 + $0x70] sm:$0xff]  ;;  %v150_v26 = vld [vmem:[%s732_s3 + $0x78] sm:$0xff] }
  0x2a   :  { %524 = vmatpush3.bf16.msra.mxu1 %v521_v40  ;;  %488 = vmatpush1.bf16.msra.mxu0 %v487_v57 }
  0x2b   :  { %526 = vmatprep.subr.bf16.mxu1 %v525_v49  ;;  %490 = vmatprep.subr.bf16.mxu0 %v489_v59 }
  0x2e   :  { %528 = vmatpush3.bf16.msra.mxu1 %v525_v49  ;;  %492 = vmatpush1.bf16.msra.mxu0 %v491_v0 }
  0x2f   :  { %530 = vmatprep.subr.bf16.mxu1 %v529_v58  ;;  %494 = vmatprep.subr.bf16.mxu0 %v493_v1 }
  0x32   :  { %532 = vmatpush3.bf16.msra.mxu1 %v529_v58  ;;  %496 = vmatpush1.bf16.msra.mxu0 %v495_v7 }
  0x33   :  { %498 = vmatprep.subr.bf16.mxu0 %v497_v9 }
  0x35   :  { %446 = vmatmul.mubr.f32.vlgmr.msra.gmra.mrb[0].mxu1 %v136_v6 }
  0x36   :  { %448 = vmatprep.mubr.f32.mxu1 %v137_v8  ;;  %500 = vmatpush1.bf16.msra.mxu0 %v499_v13 }
  0x39   :  { %449 = vmatmul.mubr.f32.gmra.mrb[2].mxu1 %v138_v12  ;;  %129 = vmatmul.mubr.f32.vlgmr.msra.gmra.mrb[0].mxu0 %v31_v16 }
  0x3a   :  { %451 = vmatprep.mubr.f32.mxu1 %v139_v14 }
  0x3d   :  { %452 = vmatmul.mubr.f32.gmra.mrb[4].mxu1 %v140_v15 }
  0x3e   :  { %454 = vmatprep.mubr.f32.mxu1 %v141_v17 }
  0x41   :  { %455 = vmatmul.mubr.f32.gmra.mrb[6].mxu1 %v142_v18 }
  0x42   :  { %457 = vmatprep.mubr.f32.mxu1 %v143_v19 }
  0x45   :  { %458 = vmatmul.mubr.f32.gmra.mrb[8].mxu1 %v144_v20 }
  0x46   :  { %460 = vmatprep.mubr.f32.mxu1 %v145_v21 }
  0x49   :  { %461 = vmatmul.mubr.f32.gmra.mrb[10].mxu1 %v146_v22 }
  0x4a   :  { %463 = vmatprep.mubr.f32.mxu1 %v147_v23 }
  0x4d   :  { %464 = vmatmul.mubr.f32.gmra.mrb[12].mxu1 %v148_v24 }
  0x4e   :  { %466 = vmatprep.mubr.f32.mxu1 %v149_v25 }
  0x51   :  { %467 = vmatmul.mubr.f32.gmra.mrb[14].mxu1 %v150_v26 }
 0x108   :  { %v447_v27 = vpop.f32.mrb[0].mxu1 }
 0x109   :  { %311 = vperm.xlu0 %538, %v447_v27   ;;  %v233_v28 = vpop.f32.mrb[1].mxu1 }
 0x10c   :  { %v450_v29 = vpop.f32.mrb[2].mxu1  ;;  %v130_v32 = vpop.f32.mrb[0].mxu0 }
 0x10d   :  { %306 = vperm.xlu0 %538, %v233_v28   ;;  %321 = vperm.xlu1 %539, %v450_v29   ;;  %v243_v30 = vpop.f32.mrb[3].mxu1  ;;  %v132_v34 = vpop.f32.mrb[1].mxu0  ;;  %v359_v49 = vrot.slane %v130_v32, %v346_v47 }
 0x10e   :  { %v347_v48 = vrot.slane %v132_v34, %v346_v47 }
 0x110   :  { %v453_v31 = vpop.f32.mrb[4].mxu1 }
 0x111   :  { %316 = vperm.xlu1 %539, %v243_v30   ;;  %v253_v33 = vpop.f32.mrb[5].mxu1 }
 0x112   :  { %326 = vperm.xlu0 %538, %v253_v33  }
 0x114   :  { %v456_v35 = vpop.f32.mrb[6].mxu1 }
 0x115   :  { %331 = vperm.xlu1 %539, %v453_v31   ;;  %v263_v36 = vpop.f32.mrb[7].mxu1 }
 0x116   :  { %336 = vperm.xlu0 %538, %v263_v36  }
 0x118   :  { %v459_v37 = vpop.f32.mrb[8].mxu1 }
 0x119   :  { %341 = vperm.xlu1 %539, %v456_v35   ;;  %v273_v38 = vpop.f32.mrb[9].mxu1 }
 0x11c   :  { %v462_v39 = vpop.f32.mrb[10].mxu1 }
 0x11d   :  { %v281_v40 = vpop.f32.mrb[11].mxu1 }
 0x120   :  { %v465_v41 = vpop.f32.mrb[12].mxu1 }
 0x121   :  { %v289_v42 = vpop.f32.mrb[13].mxu1 }
 0x124   :  { %v468_v43 = vpop.f32.mrb[14].mxu1 }
 0x125   :  { %v297_v44 = vpop.f32.mrb[15].mxu1 }
 0x188   :  { %v312_v50 = vpop.permute.xlu0 %311 }
 0x189   :  { %v349_v51 = vmul.f32 %v347_v48, %v312_v50 }
 0x18b   :  { %v361_v52 = vadd.f32 %v359_v49, %v349_v51 }
 0x18c   :  { %v307_v53 = vpop.permute.xlu0 %306  ;;  %v322_v54 = vpop.permute.xlu1 %321 }
 0x18d   :  { %369 = vst [vmem:[%s733_s4 + $0x8] sm:$0xff] %v361_v52  ;;  %v348_v55 = vmul.f32 %v347_v48, %v307_v53  ;;  %v351_v56 = vmul.f32 %v347_v48, %v322_v54 }
 0x18f   :  { %v360_v57 = vadd.f32 %v359_v49, %v348_v55  ;;  %v363_v58 = vadd.f32 %v359_v49, %v351_v56 }
 0x190   :  { %v317_v59 = vpop.permute.xlu1 %316 }
 0x191   :  { %368 = vst [vmem:[%s733_s4] sm:$0xff] %v360_v57  ;;  %371 = vst [vmem:[%s733_s4 + $0x18] sm:$0xff] %v363_v58  ;;  %v350_v60 = vmul.f32 %v347_v48, %v317_v59  ;;  %v327_v61 = vpop.permute.xlu0 %326 }
 0x192   :  { %v352_v62 = vmul.f32 %v347_v48, %v327_v61 }
 0x193   :  { %v362_v63 = vadd.f32 %v359_v49, %v350_v60 }
 0x194   :  { %v364_v0 = vadd.f32 %v359_v49, %v352_v62  ;;  %v332_v1 = vpop.permute.xlu1 %331 }
 0x195   :  { %370 = vst [vmem:[%s733_s4 + $0x10] sm:$0xff] %v362_v63  ;;  %v353_v2 = vmul.f32 %v347_v48, %v332_v1  ;;  %v337_v3 = vpop.permute.xlu0 %336 }
 0x196   :  { %372 = vst [vmem:[%s733_s4 + $0x20] sm:$0xff] %v364_v0  ;;  %v354_v4 = vmul.f32 %v347_v48, %v337_v3 }
 0x197   :  { %v365_v5 = vadd.f32 %v359_v49, %v353_v2 }
 0x198   :  { %v366_v6 = vadd.f32 %v359_v49, %v354_v4  ;;  %v342_v7 = vpop.permute.xlu1 %341 }
 0x199   :  { %373 = vst [vmem:[%s733_s4 + $0x28] sm:$0xff] %v365_v5  ;;  %v355_v8 = vmul.f32 %v347_v48, %v342_v7 }
 0x19a   :  { %374 = vst [vmem:[%s733_s4 + $0x30] sm:$0xff] %v366_v6 }
 0x19b   :  { %v367_v9 = vadd.f32 %v359_v49, %v355_v8 }
 0x19d   :  { %375 = vst [vmem:[%s733_s4 + $0x38] sm:$0xff] %v367_v9 }
 0x19e   :  { %380 = vsyncpa [#allocation3], 1 }

</bundles_post_ra>
